<compile_context>
chip_gen: v7x
topology: tpu7x:2x2x1
jax: 0.10.0
libtpu: 0.0.40
codegen_flags: <defaults>
</compile_context>

<pallas_src>
import functools

import jax
import jax.numpy as jnp
from jax.experimental import pallas as pl
from jax.experimental.pallas import tpu as pltpu

_LANES = 128     # vreg lane count
_SUBLANES = 8    # f32 sublane count


def _mlp_kernel(x_ref, w1_ref, b1_ref, w2_ref, b2_ref, w3_ref, b3_ref, o_ref):
    # Full 3-layer MLP for one batch tile; all weights resident in VMEM.
    x = x_ref[...]

    h1 = jnp.dot(x, w1_ref[...], preferred_element_type=jnp.float32) + b1_ref[...]
    h1 = jnp.maximum(h1, 0.0)

    h2 = jnp.dot(h1, w2_ref[...], preferred_element_type=jnp.float32) + b2_ref[...]
    h2 = jnp.maximum(h2, 0.0)

    out = jnp.dot(h2, w3_ref[...], preferred_element_type=jnp.float32) + b3_ref[...]
    o_ref[...] = out.astype(o_ref.dtype)  # lane-dense (tb, 128) unmasked store


def _round_up(n, m):
    return ((n + m - 1) // m) * m


@functools.partial(jax.jit, static_argnames=("max_batch_tile",))
def mlp_forward(x, params, *, max_batch_tile=512):
    """x: (B, state_size) float32.  params: dict of w1,b1,w2,b2,w3,b3."""
    w1, b1, w2, b2, w3, b3 = (params[k] for k in ("w1", "b1", "w2", "b2", "w3", "b3"))
    B, state_size = x.shape
    width = w1.shape[1]
    actions = w3.shape[1]

    # --- lane-dense output head: pad actions -> multiple of 128 (zero cols) ---
    a_pad = _round_up(actions, _LANES)
    if a_pad != actions:
        w3p = jnp.zeros((width, a_pad), w3.dtype).at[:, :actions].set(w3)
        b3p = jnp.zeros((1, a_pad), b3.dtype).at[:, :actions].set(b3)
    else:
        w3p, b3p = w3, b3

    # --- batch tiling: 8-aligned tile, capped so the double-buffered x/out
    # tiles plus weights stay tiny relative to scoped VMEM on every chip. ---
    tb = min(max_batch_tile, _round_up(B, _SUBLANES))
    b_pad = _round_up(B, tb)
    xp = x if b_pad == B else jnp.pad(x, ((0, b_pad - B), (0, 0)))

    grid = (b_pad // tb,)

    flops = 2 * b_pad * (state_size * width + width * width + width * a_pad)
    bytes_accessed = 4 * (
        b_pad * state_size + b_pad * a_pad
        + state_size * width + width
        + width * width + width
        + width * a_pad + a_pad
    )

    def full_block(shape):
        # Whole-array block, constant index_map -> stays resident across steps.
        ndim = len(shape)
        return pl.BlockSpec(shape, lambda i, _n=ndim: (0,) * _n)

    out = pl.pallas_call(
        _mlp_kernel,
        out_shape=jax.ShapeDtypeStruct((b_pad, a_pad), jnp.float32),
        grid=grid,
        in_specs=[
            pl.BlockSpec((tb, state_size), lambda i: (i, 0)),  # x: tiled over batch
            full_block(w1.shape), full_block(b1.shape),
            full_block(w2.shape), full_block(b2.shape),
            full_block(w3p.shape), full_block(b3p.shape),
        ],
        out_specs=pl.BlockSpec((tb, a_pad), lambda i: (i, 0)),
        compiler_params=pltpu.CompilerParams(
            dimension_semantics=("parallel",),  # batch tiles are independent
        ),
        cost_estimate=pl.CostEstimate(
            flops=flops, transcendentals=0, bytes_accessed=bytes_accessed),
    )(xp, w1, b1, w2, b2, w3p, b3p)

    # Strip batch-row and action-lane padding in the wrapper (fused under jit).
    return out[:B, :actions]


def init_params(key, state_size, width, actions):
    """Deterministic init mimicking nn.Linear's U(-1/sqrt(fan_in), 1/sqrt(fan_in)).
    Weights stored as (in_features, out_features) = PyTorch weight transposed."""
    ks = jax.random.split(key, 6)

    def linear(kw, kb, fan_in, fan_out):
        bound = 1.0 / jnp.sqrt(jnp.float32(fan_in))
        w = jax.random.uniform(kw, (fan_in, fan_out), jnp.float32, -bound, bound)
        b = jax.random.uniform(kb, (1, fan_out), jnp.float32, -bound, bound)
        return w, b

    w1, b1 = linear(ks[0], ks[1], state_size, width)
    w2, b2 = linear(ks[2], ks[3], width, width)
    w3, b3 = linear(ks[4], ks[5], width, actions)
    return {"w1": w1, "b1": b1, "w2": w2, "b2": b2, "w3": w3, "b3": b3}


def reference_forward(x, params):
    h1 = jnp.maximum(x @ params["w1"] + params["b1"], 0.0)
    h2 = jnp.maximum(h1 @ params["w2"] + params["b2"], 0.0)
    return h2 @ params["w3"] + params["b3"]


if __name__ == "__main__":
    # Shapes consistent with the module: batch=2, state_size=8, width=32, actions=4
    batch, state_size, width, actions = 2, 8, 32, 4

    key = jax.random.PRNGKey(0)
    k_params, k_x, k_x2 = jax.random.split(key, 3)
    params = init_params(k_params, state_size, width, actions)

    # Tiny per-step inference batch (exercises sublane padding: 2 -> 8).
    x = jax.random.normal(k_x, (batch, state_size), jnp.float32)
    out = mlp_forward(x, params)
    jax.block_until_ready(out)
    ref = reference_forward(x, params)
    assert out.shape == (batch, actions)
    assert jnp.allclose(out, ref, atol=1e-5, rtol=1e-5)

    # Replay-buffer-sized batch, not a multiple of the tile (exercises grid + padding).
    x_big = jax.random.normal(k_x2, (300, state_size), jnp.float32)
    out_big = mlp_forward(x_big, params)
    jax.block_until_ready(out_big)
    ref_big = reference_forward(x_big, params)
    assert out_big.shape == (300, actions)
    assert jnp.allclose(out_big, ref_big, atol=1e-5, rtol=1e-5)

    print("KERNEL_OK")
</pallas_src>

<mosaic_0001>
module attributes {stable_mosaic.version = 11 : i64} {
  func.func @_mlp_kernel(%arg0: i32, %arg1: memref<8x8xf32, #tpu.memory_space<vmem>>, %arg2: memref<8x32xf32, #tpu.memory_space<vmem>>, %arg3: memref<1x32xf32, #tpu.memory_space<vmem>>, %arg4: memref<32x32xf32, #tpu.memory_space<vmem>>, %arg5: memref<1x32xf32, #tpu.memory_space<vmem>>, %arg6: memref<32x128xf32, #tpu.memory_space<vmem>>, %arg7: memref<1x128xf32, #tpu.memory_space<vmem>>, %arg8: memref<8x128xf32, #tpu.memory_space<vmem>>) attributes {dimension_semantics = [#tpu.dimension_semantics<parallel>], iteration_bounds = array<i64: 1>, scalar_prefetch = 0 : i64, scratch_operands = 0 : i64, tpu.core_type = #tpu.core_type<tc>, window_params = [{transform_indices = @transform_0, window_bounds = array<i64: 8, 8>}, {pipeline_mode = #tpu.pipeline_mode<synchronous>, transform_indices = @transform_1, window_bounds = array<i64: 8, 32>}, {pipeline_mode = #tpu.pipeline_mode<synchronous>, transform_indices = @transform_2, window_bounds = array<i64: 1, 32>}, {pipeline_mode = #tpu.pipeline_mode<synchronous>, transform_indices = @transform_3, window_bounds = array<i64: 32, 32>}, {pipeline_mode = #tpu.pipeline_mode<synchronous>, transform_indices = @transform_4, window_bounds = array<i64: 1, 32>}, {pipeline_mode = #tpu.pipeline_mode<synchronous>, transform_indices = @transform_5, window_bounds = array<i64: 32, 128>}, {pipeline_mode = #tpu.pipeline_mode<synchronous>, transform_indices = @transform_6, window_bounds = array<i64: 1, 128>}, {transform_indices = @transform_7, window_bounds = array<i64: 8, 128>}]} {
    %c0 = arith.constant 0 : index
    %c0_0 = arith.constant 0 : index
    %0 = vector.load %arg1[%c0, %c0_0] : memref<8x8xf32, #tpu.memory_space<vmem>>, vector<8x8xf32>
    %c0_1 = arith.constant 0 : index
    %c0_2 = arith.constant 0 : index
    %1 = vector.load %arg2[%c0_1, %c0_2] : memref<8x32xf32, #tpu.memory_space<vmem>>, vector<8x32xf32>
    %cst = arith.constant dense<0.000000e+00> : vector<8x32xf32>
    %2 = tpu.matmul %0, %1, %cst {dimension_numbers = #tpu.dot_dimension_numbers<[1], [0], [0], [1], [0, 0, 1, 1], [], []>} : vector<8x8xf32>, vector<8x32xf32>, vector<8x32xf32> -> vector<8x32xf32>
    %c0_3 = arith.constant 0 : index
    %c0_4 = arith.constant 0 : index
    %3 = vector.load %arg3[%c0_3, %c0_4] : memref<1x32xf32, #tpu.memory_space<vmem>>, vector<1x32xf32>
    %4 = vector.broadcast %3 : vector<1x32xf32> to vector<8x32xf32>
    %5 = arith.addf %2, %4 : vector<8x32xf32>
    %cst_5 = arith.constant 0.000000e+00 : f32
    %6 = vector.broadcast %cst_5 : f32 to vector<8x32xf32>
    %7 = arith.maximumf %5, %6 : vector<8x32xf32>
    %c0_6 = arith.constant 0 : index
    %c0_7 = arith.constant 0 : index
    %8 = vector.load %arg4[%c0_6, %c0_7] : memref<32x32xf32, #tpu.memory_space<vmem>>, vector<32x32xf32>
    %cst_8 = arith.constant dense<0.000000e+00> : vector<8x32xf32>
    %9 = tpu.matmul %7, %8, %cst_8 {dimension_numbers = #tpu.dot_dimension_numbers<[1], [0], [0], [1], [0, 0, 1, 1], [], []>} : vector<8x32xf32>, vector<32x32xf32>, vector<8x32xf32> -> vector<8x32xf32>
    %c0_9 = arith.constant 0 : index
    %c0_10 = arith.constant 0 : index
    %10 = vector.load %arg5[%c0_9, %c0_10] : memref<1x32xf32, #tpu.memory_space<vmem>>, vector<1x32xf32>
    %11 = vector.broadcast %10 : vector<1x32xf32> to vector<8x32xf32>
    %12 = arith.addf %9, %11 : vector<8x32xf32>
    %cst_11 = arith.constant 0.000000e+00 : f32
    %13 = vector.broadcast %cst_11 : f32 to vector<8x32xf32>
    %14 = arith.maximumf %12, %13 : vector<8x32xf32>
    %c0_12 = arith.constant 0 : index
    %c0_13 = arith.constant 0 : index
    %15 = vector.load %arg6[%c0_12, %c0_13] : memref<32x128xf32, #tpu.memory_space<vmem>>, vector<32x128xf32>
    %cst_14 = arith.constant dense<0.000000e+00> : vector<8x128xf32>
    %16 = tpu.matmul %14, %15, %cst_14 {dimension_numbers = #tpu.dot_dimension_numbers<[1], [0], [0], [1], [0, 0, 1, 1], [], []>} : vector<8x32xf32>, vector<32x128xf32>, vector<8x128xf32> -> vector<8x128xf32>
    %c0_15 = arith.constant 0 : index
    %c0_16 = arith.constant 0 : index
    %17 = vector.load %arg7[%c0_15, %c0_16] : memref<1x128xf32, #tpu.memory_space<vmem>>, vector<1x128xf32>
    %18 = vector.broadcast %17 : vector<1x128xf32> to vector<8x128xf32>
    %19 = arith.addf %16, %18 : vector<8x128xf32>
    %c0_17 = arith.constant 0 : index
    %c0_18 = arith.constant 0 : index
    %20 = vector.load %arg8[%c0_17, %c0_18] : memref<8x128xf32, #tpu.memory_space<vmem>>, vector<8x128xf32>
    tpu.vector_store %arg8[%c0_17, %c0_18], %19 {strides = array<i32>} : memref<8x128xf32, #tpu.memory_space<vmem>>, vector<8x128xf32>,
    return
  }
  func.func @transform_0(%arg0: i32) -> (i32, i32) {
    %c0_i32 = arith.constant 0 : i32
    %c0_i32_0 = arith.constant 0 : i32
    return %arg0, %c0_i32 : i32, i32
  }
  func.func @transform_1(%arg0: i32) -> (i32, i32) {
    %c0_i32 = arith.constant 0 : i32
    %c0_i32_0 = arith.constant 0 : i32
    %c0_i32_1 = arith.constant 0 : i32
    return %c0_i32, %c0_i32_0 : i32, i32
  }
  func.func @transform_2(%arg0: i32) -> (i32, i32) {
    %c0_i32 = arith.constant 0 : i32
    %c0_i32_0 = arith.constant 0 : i32
    %c0_i32_1 = arith.constant 0 : i32
    return %c0_i32, %c0_i32_0 : i32, i32
  }
  func.func @transform_3(%arg0: i32) -> (i32, i32) {
    %c0_i32 = arith.constant 0 : i32
    %c0_i32_0 = arith.constant 0 : i32
    %c0_i32_1 = arith.constant 0 : i32
    return %c0_i32, %c0_i32_0 : i32, i32
  }
  func.func @transform_4(%arg0: i32) -> (i32, i32) {
    %c0_i32 = arith.constant 0 : i32
    %c0_i32_0 = arith.constant 0 : i32
    %c0_i32_1 = arith.constant 0 : i32
    return %c0_i32, %c0_i32_0 : i32, i32
  }
  func.func @transform_5(%arg0: i32) -> (i32, i32) {
    %c0_i32 = arith.constant 0 : i32
    %c0_i32_0 = arith.constant 0 : i32
    %c0_i32_1 = arith.constant 0 : i32
    return %c0_i32, %c0_i32_0 : i32, i32
  }
  func.func @transform_6(%arg0: i32) -> (i32, i32) {
    %c0_i32 = arith.constant 0 : i32
    %c0_i32_0 = arith.constant 0 : i32
    %c0_i32_1 = arith.constant 0 : i32
    return %c0_i32, %c0_i32_0 : i32, i32
  }
  func.func @transform_7(%arg0: i32) -> (i32, i32) {
    %c0_i32 = arith.constant 0 : i32
    %c0_i32_0 = arith.constant 0 : i32
    return %arg0, %c0_i32 : i32, i32
  }
}

</mosaic_0001>

<bundles_post_ra>
// kernel: mlp_forward.1
= control target key start
LH: loop header
LB: loop body
LE: loop exit
PB: predicated region body
PF: predicated region fallthrough
CT: control target
= control target key end

     0   :  { %vm35_vm0 = vcmask 64512   ;;  %v345_v0 = vmov 0.0   ;;  %vm346_vm1 = vmmov 0   ;;  %v347_v4 = vmov 0.0|0.0   ;;  %s430_s1 = inlined_call_operand.vmem [shape: f32[8,32], index: 1, kind: input, shape index: {}]   ;;  %s431_s0 = inlined_call_operand.vmem [shape: f32[8,8], index: 0, kind: input, shape index: {}]   ;;  %s432_s3 = inlined_call_operand.vmem [shape: f32[32,32], index: 3, kind: input, shape index: {}]   ;;  %s433_s5 = inlined_call_operand.vmem [shape: f32[32,128], index: 5, kind: input, shape index: {}]   ;;  %s434_s2 = inlined_call_operand.vmem [shape: f32[1,32], index: 2, kind: input, shape index: {}]   ;;  %s435_s4 = inlined_call_operand.vmem [shape: f32[1,32], index: 4, kind: input, shape index: {}]   ;;  %s436_s6 = inlined_call_operand.vmem [shape: f32[1,128], index: 6, kind: input, shape index: {}]   ;;  %s437_s7 = inlined_call_operand.vmem [shape: f32[8,128], index: 7, kind: output, shape index: {}]  }
   0x1   :  { %303 = vmatprep.subr.mxu0 %v345_v0  ;;  %v27_v1 = vld [vmem:[%s430_s1] sm:$0xff]  ;;  %305 = vmatprep.mubr.msk.f32.mxu0 %vm346_vm1, %v345_v0  ;;  %v111_v5 = vld [vmem:[%s432_s3 + $0x8] sm:$0xff]  ;;  %v112_v7 = vld [vmem:[%s432_s3 + $0x10] sm:$0xff]  ;;  %vm121_vm2 = vcmask 261120  }
   0x2   :  { %v26_v2 = vld [vmem:[%s431_s0] sm:$0xff]  ;;  %304 = vmatpush3.msra.mxu0 %v27_v1  ;;  %330 = vmatprep.subr.bf16.mxu1 %v347_v4  ;;  %v113_v8 = vld [vmem:[%s432_s3 + $0x18] sm:$0xff]  ;;  %v197_v11 = vld [vmem:[%s433_s5 + $0x8] sm:$0xff] }
   0x3   :  { %v110_v3 = vld [vmem:[%s432_s3] sm:$0xff]  ;;  %306 = vmatmul.mubr.msk.f32.vlgmr.msra.gmra.mrb[0].mxu0 %vm35_vm0, %v26_v2  ;;  %316 = vmatprep.mubr.msk.f32.mxu1 %vm346_vm1, %v345_v0  ;;  %v334_v9 = vpack.c.bf16 %v113_v8, %v112_v7  ;;  %v198_v18 = vld [vmem:[%s433_s5 + $0x10] sm:$0xff]  ;;  %v199_v19 = vld [vmem:[%s433_s5 + $0x18] sm:$0xff] }
   0x4   :  { %v331_v6 = vpack.c.bf16 %v111_v5, %v110_v3  ;;  %336 = vmatprep.subr.bf16.mxu0 %v347_v4  ;;  %327 = vmatprep.mubr.msk.f32.mxu0 %vm346_vm1, %v345_v0  ;;  %v196_v10 = vld [vmem:[%s433_s5] sm:$0xff]  ;;  %v340_v20 = vpack.c.bf16 %v199_v19, %v198_v18 }
   0x5   :  { %v337_v12 = vpack.c.bf16 %v197_v11, %v196_v10  ;;  %v285_v13 = vld [vmem:[%s434_s2] ss:$0 sm:$0xff] }
   0x6   :  { %332 = vmatpush3.bf16.msra.mxu1 %v331_v6  ;;  %v287_v21 = vld [vmem:[%s435_s4] ss:$0 sm:$0xff] }
   0x7   :  { %333 = vmatprep.subr.bf16.mxu1 %v347_v4  ;;  %338 = vmatpush3.bf16.msra.mxu0 %v337_v12  ;;  %v289_v26 = vld [vmem:[%s436_s6] ss:$0 sm:$0xff] }
   0x8   :  { %339 = vmatprep.subr.bf16.mxu0 %v347_v4 }
   0xa   :  { %335 = vmatpush3.bf16.msra.mxu1 %v334_v9 }
   0xb   :  { %341 = vmatpush3.bf16.msra.mxu0 %v340_v20 }
  0xd6   :  { %v105_v14 = vpop.f32.mrb[0].mxu0 }
  0xd7   :  { %v106_v15 = vadd.f32 %v285_v13, %v105_v14  ;;  %v307_v16 = vpop.f32.mrb[1].mxu0 }
  0xd9   :  { %v109_v17 = vmax.f32 %v106_v15, 0.0 }
  0xdb   :  { %317 = vmatmul.mubr.msk.f32.vlgmr.msra.gmra.mrb[0].mxu1 %vm121_vm2, %v109_v17 }
 0x1ae   :  { %v191_v22 = vpop.f32.mrb[0].mxu1 }
 0x1af   :  { %v192_v23 = vadd.f32 %v287_v21, %v191_v22  ;;  %v318_v24 = vpop.f32.mrb[1].mxu1 }
 0x1b1   :  { %v195_v25 = vmax.f32 %v192_v23, 0.0 }
 0x1b3   :  { %328 = vmatmul.mubr.msk.f32.vlgmr.msra.gmra.mrb[2].mxu0 %vm121_vm2, %v195_v25 }
 0x286   :  { %v276_v27 = vpop.f32.mrb[2].mxu0 }
 0x287   :  { %v277_v28 = vadd.f32 %v289_v26, %v276_v27  ;;  %v329_v29 = vpop.f32.mrb[3].mxu0 }
 0x289   :  { %280 = vst [vmem:[%s437_s7] sm:$0xff] %v277_v28 }

</bundles_post_ra>
